<compile_context>
chip_gen: v5e
topology: v5e:2x2
jax: 0.10.0
libtpu: 0.0.40
codegen_flags: <defaults>
</compile_context>

<pallas_src>
import math

import jax
import jax.numpy as jnp
from jax.experimental import pallas as pl
from jax.experimental.pallas import tpu as pltpu


def _self_attention_kernel(x_ref, wq_ref, bq_ref, wkv_ref, bkv_ref,
                           wp_ref, bp_ref, hsel_ref, hselt_ref, out_ref):
    """One block of `Bb` batch elements per grid step.

    x_ref:     (Bb, T, C)   VMEM, f32  (pipelined per batch block)
    wq_ref:    (C, C)       VMEM, bf16 (resident; 1/sqrt(hd) folded in)
    bq_ref:    (1, C)       VMEM, f32  (1/sqrt(hd) folded in)
    wkv_ref:   (C, 2C)      VMEM, bf16 (fused K|V projection weights)
    bkv_ref:   (1, 2C)      VMEM, f32
    wp_ref:    (C, O)       VMEM, bf16
    bp_ref:    (1, O)       VMEM, f32
    hsel_ref:  (C, H)       VMEM, bf16  0/1 head-selection matrix
    hselt_ref: (H, C)       VMEM, bf16  its transpose
    out_ref:   (Bb, O)      VMEM, f32
    """
    Bb, T, C = x_ref.shape
    H = hsel_ref.shape[1]

    xb = x_ref[...].astype(jnp.bfloat16)                  # (Bb, T, C): VPU cast
    x0 = xb[:, 0, :]                                      # (Bb, C) - only t=0 is consumed
    x_flat = xb.reshape(Bb * T, C)                        # (Bb*T, C)

    # Query for the t=0 rows only (scale already folded into wq/bq).
    q0 = jnp.dot(x0, wq_ref[...],
                 preferred_element_type=jnp.float32) + bq_ref[...]        # (Bb, C) f32

    # Fused K|V projection: a single (Bb*T, C) @ (C, 2C) GEMM.
    kv = jnp.dot(x_flat, wkv_ref[...],
                 preferred_element_type=jnp.float32) + bkv_ref[...]       # (Bb*T, 2C) f32
    k3 = kv[:, :C].reshape(Bb, T, C)                      # (Bb, T, C)
    v_flat = kv[:, C:]                                    # (Bb*T, C)

    # Per-head scores for the single query row, heads kept in the lane dim:
    #   scores[b, t, h] = sum_{c in head h} q0[b, c] * k[b, t, c]
    prod = k3 * q0[:, None, :]                            # (Bb, T, C) f32
    scores = jnp.dot(prod.reshape(Bb * T, C).astype(jnp.bfloat16), hsel_ref[...],
                     preferred_element_type=jnp.float32)                  # (Bb*T, H)
    scores3 = scores.reshape(Bb, T, H)                    # (Bb, T, H)

    # Numerically-stable softmax over T (axis=1), per head; reciprocal on EUP.
    m = jnp.max(scores3, axis=1, keepdims=True)           # (Bb, 1, H)
    e = jnp.exp(scores3 - m)                              # (Bb, T, H)
    denom = jnp.sum(e, axis=1, keepdims=True)             # (Bb, 1, H)
    p = e * pl.reciprocal(denom, approx=True)             # (Bb, T, H)

    # Expand per-head weights back to C lanes and reduce over T:
    #   y0[b, c] = sum_t p[b, t, head(c)] * v[b, t, c]
    p_exp = jnp.dot(p.reshape(Bb * T, H).astype(jnp.bfloat16), hselt_ref[...],
                    preferred_element_type=jnp.float32)                   # (Bb*T, C)
    y0 = jnp.sum((p_exp * v_flat).reshape(Bb, T, C), axis=1)              # (Bb, C)

    # Output projection; heads already in natural column order -> no concat.
    out = jnp.dot(y0.astype(jnp.bfloat16), wp_ref[...],
                  preferred_element_type=jnp.float32) + bp_ref[...]       # (Bb, O)
    out_ref[...] = out.astype(out_ref.dtype)


def _round_up(a, m):
    return (a + m - 1) // m * m


def _choose_block_b(B):
    """Batch block size: fill MXU rows (target 128), keep the output sublane
    dim dense (multiple of 8 unless one block covers the whole batch), and keep
    >= 2 grid blocks when the batch allows (v7x megacore sharding)."""
    if B <= 8:
        return B
    half = max(8, (B // 2) // 8 * 8)
    return min(128, half)


def _pick_vmem_limit():
    """Per-generation VMEM budget: ~85% of physical capacity, capped."""
    try:
        cap = pltpu.get_tpu_info().vmem_capacity_bytes
        return min(int(cap * 0.85), 112 * 1024 * 1024)
    except Exception:
        return 48 * 1024 * 1024   # conservative: under v7x's 64 MiB physical


def self_attention_pallas(x, params, n_head, *, block_b=None, vmem_limit_bytes=None):
    """x: (B, T, C) float32.  params: dict with wq,bq,wk,bk,wv,bv,wp,bp."""
    B, T, C = x.shape
    assert C % n_head == 0
    hd = C // n_head
    O = params["wp"].shape[1]
    scale = 1.0 / math.sqrt(hd)

    # Fold the 1/sqrt(hd) attention scale into the query weights/bias once.
    wq = (params["wq"] * scale).astype(jnp.bfloat16)
    bq = (params["bq"] * scale).astype(jnp.float32)
    wkv = jnp.concatenate([params["wk"], params["wv"]], axis=1).astype(jnp.bfloat16)
    bkv = jnp.concatenate([params["bk"], params["bv"]], axis=1).astype(jnp.float32)
    wp = params["wp"].astype(jnp.bfloat16)
    bp = params["bp"].astype(jnp.float32)

    # 0/1 head-selection matrix (exact in bf16): hsel[c, h] = 1 iff col c in head h.
    head_of_col = jnp.arange(C, dtype=jnp.int32) // hd
    hsel = (head_of_col[:, None] ==
            jnp.arange(n_head, dtype=jnp.int32)[None, :]).astype(jnp.bfloat16)  # (C, H)
    hsel_t = hsel.T                                                              # (H, C)

    if block_b is None:
        block_b = _choose_block_b(B)
    Bp = _round_up(B, block_b)
    x_p = x.astype(jnp.float32)            # x stays f32; cast to bf16 inside the kernel
    if Bp != B:
        x_p = jnp.pad(x_p, ((0, Bp - B), (0, 0), (0, 0)))

    if vmem_limit_bytes is None:
        vmem_limit_bytes = _pick_vmem_limit()

    const2 = lambda b: (0, 0)

    out = pl.pallas_call(
        _self_attention_kernel,
        out_shape=jax.ShapeDtypeStruct((Bp, O), jnp.float32),
        grid=(Bp // block_b,),
        in_specs=[
            pl.BlockSpec((block_b, T, C), lambda b: (b, 0, 0)),  # x: pipelined batch blocks
            pl.BlockSpec((C, C), const2),          # wq   (resident)
            pl.BlockSpec((1, C), const2),          # bq
            pl.BlockSpec((C, 2 * C), const2),      # wkv  (resident)
            pl.BlockSpec((1, 2 * C), const2),      # bkv
            pl.BlockSpec((C, O), const2),          # wp
            pl.BlockSpec((1, O), const2),          # bp
            pl.BlockSpec((C, n_head), const2),     # hsel
            pl.BlockSpec((n_head, C), const2),     # hsel^T
        ],
        out_specs=pl.BlockSpec((block_b, O), lambda b: (b, 0)),   # dense 2-D store
        compiler_params=pltpu.CompilerParams(
            dimension_semantics=("parallel",),     # v7x: shard batch blocks over 2 TCs
            vmem_limit_bytes=vmem_limit_bytes,
        ),
    )(x_p, wq, bq, wkv, bkv, wp, bp, hsel, hsel_t)
    return out[:B]


def self_attention_reference(x, params, n_head, matmul_dtype=None):
    """Pure-JAX reference mirroring the PyTorch forward (eval mode).

    matmul_dtype=None      -> exact f32 reference of the module.
    matmul_dtype=bfloat16  -> matched-precision reference (bf16 MXU inputs,
                              f32 accumulation), close to the kernel's policy.
    """
    B, T, C = x.shape
    hd = C // n_head
    cast = (lambda a: a.astype(matmul_dtype)) if matmul_dtype is not None else (lambda a: a)

    q = jnp.einsum('btc,cd->btd', cast(x), cast(params["wq"]),
                   preferred_element_type=jnp.float32) + params["bq"]
    k = jnp.einsum('btc,cd->btd', cast(x), cast(params["wk"]),
                   preferred_element_type=jnp.float32) + params["bk"]
    v = jnp.einsum('btc,cd->btd', cast(x), cast(params["wv"]),
                   preferred_element_type=jnp.float32) + params["bv"]
    q = q.reshape(B, T, n_head, hd).transpose(0, 2, 1, 3)
    k = k.reshape(B, T, n_head, hd).transpose(0, 2, 1, 3)
    v = v.reshape(B, T, n_head, hd).transpose(0, 2, 1, 3)
    att = jnp.einsum('bhqd,bhkd->bhqk', q, k,
                     preferred_element_type=jnp.float32) * (1.0 / math.sqrt(hd))
    att = jax.nn.softmax(att, axis=-1)
    y = jnp.einsum('bhqk,bhkd->bhqd', att, v, preferred_element_type=jnp.float32)
    y = y.transpose(0, 2, 1, 3).reshape(B, T, C)
    y0 = y[:, 0, :]                                  # (B, C)
    return jnp.einsum('bc,co->bo', cast(y0), cast(params["wp"]),
                      preferred_element_type=jnp.float32) + params["bp"]


def init_params(key, n_embd, output_size):
    ks = jax.random.split(key, 8)
    s = 0.02
    return {
        "wq": s * jax.random.normal(ks[0], (n_embd, n_embd), jnp.float32),
        "bq": s * jax.random.normal(ks[1], (1, n_embd), jnp.float32),
        "wk": s * jax.random.normal(ks[2], (n_embd, n_embd), jnp.float32),
        "bk": s * jax.random.normal(ks[3], (1, n_embd), jnp.float32),
        "wv": s * jax.random.normal(ks[4], (n_embd, n_embd), jnp.float32),
        "bv": s * jax.random.normal(ks[5], (1, n_embd), jnp.float32),
        "wp": s * jax.random.normal(ks[6], (n_embd, output_size), jnp.float32),
        "bp": s * jax.random.normal(ks[7], (1, output_size), jnp.float32),
    }


if __name__ == "__main__":
    # Small shapes consistent with the module's forward: x is (B, T, C)
    B, T, C = 2, 8, 32
    n_head = 4
    output_size = 16

    key = jax.random.PRNGKey(0)
    kx, kp = jax.random.split(key)
    x = jax.random.normal(kx, (B, T, C), jnp.float32)
    params = init_params(kp, C, output_size)

    out = self_attention_pallas(x, params, n_head)
    out = jax.block_until_ready(out)
    assert out.shape == (B, output_size)

    # Check vs. a matched-precision (bf16 MXU inputs / f32 accum) reference.
    ref_matched = self_attention_reference(x, params, n_head, matmul_dtype=jnp.bfloat16)
    assert jnp.allclose(out, ref_matched, atol=5e-4, rtol=5e-3), \
        "mismatch vs matched-precision reference"

    # Looser check vs. the exact f32 reference (bf16 MXU inputs ~1e-4 abs error).
    ref_f32 = self_attention_reference(x, params, n_head)
    assert jnp.allclose(out, ref_f32, atol=2e-3, rtol=2e-2), \
        "mismatch vs f32 reference"

    print("KERNEL_OK")
</pallas_src>

<mosaic_0001>
module attributes {stable_mosaic.version = 11 : i64} {
  func.func @_self_attention_kernel(%arg0: i32, %arg1: memref<2x8x32xf32, #tpu.memory_space<vmem>>, %arg2: memref<32x32xbf16, #tpu.memory_space<vmem>>, %arg3: memref<1x32xf32, #tpu.memory_space<vmem>>, %arg4: memref<32x64xbf16, #tpu.memory_space<vmem>>, %arg5: memref<1x64xf32, #tpu.memory_space<vmem>>, %arg6: memref<32x16xbf16, #tpu.memory_space<vmem>>, %arg7: memref<1x16xf32, #tpu.memory_space<vmem>>, %arg8: memref<32x4xbf16, #tpu.memory_space<vmem>>, %arg9: memref<4x32xbf16, #tpu.memory_space<vmem>>, %arg10: memref<2x16xf32, #tpu.memory_space<vmem>>) attributes {dimension_semantics = [#tpu.dimension_semantics<parallel>], iteration_bounds = array<i64: 1>, scalar_prefetch = 0 : i64, scratch_operands = 0 : i64, tpu.core_type = #tpu.core_type<tc>, window_params = [{transform_indices = @transform_0, window_bounds = array<i64: 2, 8, 32>}, {pipeline_mode = #tpu.pipeline_mode<synchronous>, transform_indices = @transform_1, window_bounds = array<i64: 32, 32>}, {pipeline_mode = #tpu.pipeline_mode<synchronous>, transform_indices = @transform_2, window_bounds = array<i64: 1, 32>}, {pipeline_mode = #tpu.pipeline_mode<synchronous>, transform_indices = @transform_3, window_bounds = array<i64: 32, 64>}, {pipeline_mode = #tpu.pipeline_mode<synchronous>, transform_indices = @transform_4, window_bounds = array<i64: 1, 64>}, {pipeline_mode = #tpu.pipeline_mode<synchronous>, transform_indices = @transform_5, window_bounds = array<i64: 32, 16>}, {pipeline_mode = #tpu.pipeline_mode<synchronous>, transform_indices = @transform_6, window_bounds = array<i64: 1, 16>}, {pipeline_mode = #tpu.pipeline_mode<synchronous>, transform_indices = @transform_7, window_bounds = array<i64: 32, 4>}, {pipeline_mode = #tpu.pipeline_mode<synchronous>, transform_indices = @transform_8, window_bounds = array<i64: 4, 32>}, {transform_indices = @transform_9, window_bounds = array<i64: 2, 16>}]} {
    %c0 = arith.constant 0 : index
    %c0_0 = arith.constant 0 : index
    %c0_1 = arith.constant 0 : index
    %0 = vector.load %arg1[%c0, %c0_0, %c0_1] : memref<2x8x32xf32, #tpu.memory_space<vmem>>, vector<2x8x32xf32>
    %1 = arith.truncf %0 : vector<2x8x32xf32> to vector<2x8x32xbf16>
    %2 = vector.extract_strided_slice %1 {offsets = [0, 0, 0], sizes = [2, 1, 32], strides = [1, 1, 1]} : vector<2x8x32xbf16> to vector<2x1x32xbf16>
    %3 = vector.shape_cast %2 : vector<2x1x32xbf16> to vector<2x32xbf16>
    %4 = vector.shape_cast %1 : vector<2x8x32xbf16> to vector<16x32xbf16>
    %c0_2 = arith.constant 0 : index
    %c0_3 = arith.constant 0 : index
    %5 = vector.load %arg2[%c0_2, %c0_3] : memref<32x32xbf16, #tpu.memory_space<vmem>>, vector<32x32xbf16>
    %cst = arith.constant dense<0.000000e+00> : vector<2x32xf32>
    %6 = tpu.matmul %3, %5, %cst {dimension_numbers = #tpu.dot_dimension_numbers<[1], [0], [0], [1], [0, 0, 1, 1], [], []>} : vector<2x32xbf16>, vector<32x32xbf16>, vector<2x32xf32> -> vector<2x32xf32>
    %c0_4 = arith.constant 0 : index
    %c0_5 = arith.constant 0 : index
    %7 = vector.load %arg3[%c0_4, %c0_5] : memref<1x32xf32, #tpu.memory_space<vmem>>, vector<1x32xf32>
    %8 = vector.broadcast %7 : vector<1x32xf32> to vector<2x32xf32>
    %9 = arith.addf %6, %8 : vector<2x32xf32>
    %c0_6 = arith.constant 0 : index
    %c0_7 = arith.constant 0 : index
    %10 = vector.load %arg4[%c0_6, %c0_7] : memref<32x64xbf16, #tpu.memory_space<vmem>>, vector<32x64xbf16>
    %cst_8 = arith.constant dense<0.000000e+00> : vector<16x64xf32>
    %11 = tpu.matmul %4, %10, %cst_8 {dimension_numbers = #tpu.dot_dimension_numbers<[1], [0], [0], [1], [0, 0, 1, 1], [], []>} : vector<16x32xbf16>, vector<32x64xbf16>, vector<16x64xf32> -> vector<16x64xf32>
    %c0_9 = arith.constant 0 : index
    %c0_10 = arith.constant 0 : index
    %12 = vector.load %arg5[%c0_9, %c0_10] : memref<1x64xf32, #tpu.memory_space<vmem>>, vector<1x64xf32>
    %13 = vector.broadcast %12 : vector<1x64xf32> to vector<16x64xf32>
    %14 = arith.addf %11, %13 : vector<16x64xf32>
    %15 = vector.extract_strided_slice %14 {offsets = [0, 0], sizes = [16, 32], strides = [1, 1]} : vector<16x64xf32> to vector<16x32xf32>
    %16 = vector.shape_cast %15 : vector<16x32xf32> to vector<2x8x32xf32>
    %17 = vector.extract_strided_slice %14 {offsets = [0, 32], sizes = [16, 32], strides = [1, 1]} : vector<16x64xf32> to vector<16x32xf32>
    %18 = vector.shape_cast %9 : vector<2x32xf32> to vector<2x1x32xf32>
    %19 = vector.broadcast %18 : vector<2x1x32xf32> to vector<2x8x32xf32>
    %20 = arith.mulf %16, %19 : vector<2x8x32xf32>
    %21 = vector.shape_cast %20 : vector<2x8x32xf32> to vector<16x32xf32>
    %22 = arith.truncf %21 : vector<16x32xf32> to vector<16x32xbf16>
    %c0_11 = arith.constant 0 : index
    %c0_12 = arith.constant 0 : index
    %23 = vector.load %arg8[%c0_11, %c0_12] : memref<32x4xbf16, #tpu.memory_space<vmem>>, vector<32x4xbf16>
    %cst_13 = arith.constant dense<0.000000e+00> : vector<16x4xf32>
    %24 = tpu.matmul %22, %23, %cst_13 {dimension_numbers = #tpu.dot_dimension_numbers<[1], [0], [0], [1], [0, 0, 1, 1], [], []>} : vector<16x32xbf16>, vector<32x4xbf16>, vector<16x4xf32> -> vector<16x4xf32>
    %25 = vector.shape_cast %24 : vector<16x4xf32> to vector<2x8x4xf32>
    %cst_14 = arith.constant dense<0xFF800000> : vector<2x4xf32>
    %26 = vector.multi_reduction <maximumf>, %25, %cst_14 [1] : vector<2x8x4xf32> to vector<2x4xf32>
    %27 = vector.shape_cast %26 : vector<2x4xf32> to vector<2x1x4xf32>
    %28 = vector.broadcast %27 : vector<2x1x4xf32> to vector<2x8x4xf32>
    %29 = arith.subf %25, %28 : vector<2x8x4xf32>
    %30 = math.exp %29 : vector<2x8x4xf32>
    %cst_15 = arith.constant dense<0.000000e+00> : vector<2x4xf32>
    %31 = vector.multi_reduction <add>, %30, %cst_15 [1] : vector<2x8x4xf32> to vector<2x4xf32>
    %32 = vector.shape_cast %31 : vector<2x4xf32> to vector<2x1x4xf32>
    %33 = tpu.reciprocal %32 {approx = true} : vector<2x1x4xf32> -> vector<2x1x4xf32>
    %34 = vector.broadcast %33 : vector<2x1x4xf32> to vector<2x8x4xf32>
    %35 = arith.mulf %30, %34 : vector<2x8x4xf32>
    %36 = vector.shape_cast %35 : vector<2x8x4xf32> to vector<16x4xf32>
    %37 = arith.truncf %36 : vector<16x4xf32> to vector<16x4xbf16>
    %c0_16 = arith.constant 0 : index
    %c0_17 = arith.constant 0 : index
    %38 = vector.load %arg9[%c0_16, %c0_17] : memref<4x32xbf16, #tpu.memory_space<vmem>>, vector<4x32xbf16>
    %cst_18 = arith.constant dense<0.000000e+00> : vector<16x32xf32>
    %39 = tpu.matmul %37, %38, %cst_18 {dimension_numbers = #tpu.dot_dimension_numbers<[1], [0], [0], [1], [0, 0, 1, 1], [], []>} : vector<16x4xbf16>, vector<4x32xbf16>, vector<16x32xf32> -> vector<16x32xf32>
    %40 = arith.mulf %39, %17 : vector<16x32xf32>
    %41 = vector.shape_cast %40 : vector<16x32xf32> to vector<2x8x32xf32>
    %cst_19 = arith.constant dense<0.000000e+00> : vector<2x32xf32>
    %42 = vector.multi_reduction <add>, %41, %cst_19 [1] : vector<2x8x32xf32> to vector<2x32xf32>
    %43 = arith.truncf %42 : vector<2x32xf32> to vector<2x32xbf16>
    %c0_20 = arith.constant 0 : index
    %c0_21 = arith.constant 0 : index
    %44 = vector.load %arg6[%c0_20, %c0_21] : memref<32x16xbf16, #tpu.memory_space<vmem>>, vector<32x16xbf16>
    %cst_22 = arith.constant dense<0.000000e+00> : vector<2x16xf32>
    %45 = tpu.matmul %43, %44, %cst_22 {dimension_numbers = #tpu.dot_dimension_numbers<[1], [0], [0], [1], [0, 0, 1, 1], [], []>} : vector<2x32xbf16>, vector<32x16xbf16>, vector<2x16xf32> -> vector<2x16xf32>
    %c0_23 = arith.constant 0 : index
    %c0_24 = arith.constant 0 : index
    %46 = vector.load %arg7[%c0_23, %c0_24] : memref<1x16xf32, #tpu.memory_space<vmem>>, vector<1x16xf32>
    %47 = vector.broadcast %46 : vector<1x16xf32> to vector<2x16xf32>
    %48 = arith.addf %45, %47 : vector<2x16xf32>
    %c0_25 = arith.constant 0 : index
    %c0_26 = arith.constant 0 : index
    %49 = vector.load %arg10[%c0_25, %c0_26] : memref<2x16xf32, #tpu.memory_space<vmem>>, vector<2x16xf32>
    tpu.vector_store %arg10[%c0_25, %c0_26], %48 {strides = array<i32>} : memref<2x16xf32, #tpu.memory_space<vmem>>, vector<2x16xf32>,
    return
  }
  func.func @transform_0(%arg0: i32) -> (i32, i32, i32) {
    %c0_i32 = arith.constant 0 : i32
    %c0_i32_0 = arith.constant 0 : i32
    %c0_i32_1 = arith.constant 0 : i32
    return %arg0, %c0_i32, %c0_i32_0 : i32, i32, i32
  }
  func.func @transform_1(%arg0: i32) -> (i32, i32) {
    %c0_i32 = arith.constant 0 : i32
    %c0_i32_0 = arith.constant 0 : i32
    %c0_i32_1 = arith.constant 0 : i32
    return %c0_i32, %c0_i32_0 : i32, i32
  }
  func.func @transform_2(%arg0: i32) -> (i32, i32) {
    %c0_i32 = arith.constant 0 : i32
    %c0_i32_0 = arith.constant 0 : i32
    %c0_i32_1 = arith.constant 0 : i32
    return %c0_i32, %c0_i32_0 : i32, i32
  }
  func.func @transform_3(%arg0: i32) -> (i32, i32) {
    %c0_i32 = arith.constant 0 : i32
    %c0_i32_0 = arith.constant 0 : i32
    %c0_i32_1 = arith.constant 0 : i32
    return %c0_i32, %c0_i32_0 : i32, i32
  }
  func.func @transform_4(%arg0: i32) -> (i32, i32) {
    %c0_i32 = arith.constant 0 : i32
    %c0_i32_0 = arith.constant 0 : i32
    %c0_i32_1 = arith.constant 0 : i32
    return %c0_i32, %c0_i32_0 : i32, i32
  }
  func.func @transform_5(%arg0: i32) -> (i32, i32) {
    %c0_i32 = arith.constant 0 : i32
    %c0_i32_0 = arith.constant 0 : i32
    %c0_i32_1 = arith.constant 0 : i32
    return %c0_i32, %c0_i32_0 : i32, i32
  }
  func.func @transform_6(%arg0: i32) -> (i32, i32) {
    %c0_i32 = arith.constant 0 : i32
    %c0_i32_0 = arith.constant 0 : i32
    %c0_i32_1 = arith.constant 0 : i32
    return %c0_i32, %c0_i32_0 : i32, i32
  }
  func.func @transform_7(%arg0: i32) -> (i32, i32) {
    %c0_i32 = arith.constant 0 : i32
    %c0_i32_0 = arith.constant 0 : i32
    %c0_i32_1 = arith.constant 0 : i32
    return %c0_i32, %c0_i32_0 : i32, i32
  }
  func.func @transform_8(%arg0: i32) -> (i32, i32) {
    %c0_i32 = arith.constant 0 : i32
    %c0_i32_0 = arith.constant 0 : i32
    %c0_i32_1 = arith.constant 0 : i32
    return %c0_i32, %c0_i32_0 : i32, i32
  }
  func.func @transform_9(%arg0: i32) -> (i32, i32) {
    %c0_i32 = arith.constant 0 : i32
    %c0_i32_0 = arith.constant 0 : i32
    return %arg0, %c0_i32 : i32, i32
  }
}

</mosaic_0001>

<bundles_post_ra>
// kernel: tpu_custom_call.1
= control target key start
LH: loop header
LB: loop body
LE: loop exit
PB: predicated region body
PF: predicated region fallthrough
CT: control target
= control target key end

     0   :  { %14 = vsyncpa [#allocation3], 0  ;;  %s557_s0 = inlined_call_operand.vmem [shape: f32[2,8,32], index: 0, kind: input, shape index: {}]   ;;  %s558_s1 = inlined_call_operand.vmem [shape: bf16[32,32], index: 1, kind: input, shape index: {}]   ;;  %s559_s2 = inlined_call_operand.vmem [shape: f32[1,32], index: 2, kind: input, shape index: {}]   ;;  %s560_s3 = inlined_call_operand.hbm [shape: bf16[32,64], index: 3, kind: input, shape index: {}]   ;;  %s561_s4 = inlined_call_operand.vmem [shape: f32[1,64], index: 4, kind: input, shape index: {}]   ;;  %s562_s5 = inlined_call_operand.vmem [shape: bf16[32,16], index: 5, kind: input, shape index: {}]   ;;  %s563_s6 = inlined_call_operand.vmem [shape: f32[1,16], index: 6, kind: input, shape index: {}]   ;;  %s564_s7 = inlined_call_operand.vmem [shape: bf16[32,4], index: 7, kind: input, shape index: {}]   ;;  %s565_s8 = inlined_call_operand.vmem [shape: bf16[4,32], index: 8, kind: input, shape index: {}]   ;;  %s566_s9 = inlined_call_operand.hbm [shape: f32[2,16], index: 9, kind: output, shape index: {}]  }
   0x1   :  { %15 = vsyncpa [#allocation4], 0  ;;  %s26_s11 = sshll.u32 %s560_s3, 4  ;;  %s447_s12 = smov [#allocation2]   ;;  %s27_s11 = int_to_ptr.hbm [resolvable:$true] %s26_s11 }
   0x2   :  { %s28_s13 = sshll.u32 %s447_s12, 4  ;;  %s448_s14 = smov 64   ;;  %s29_s13 = int_to_ptr.vmem [resolvable:$true] %s28_s13 }
   0x3   :  { %s449_s15 = smov 4  }
   0x4   :  { %34 = dma.hbm_to_vmem [thread:$0]  %s27_s11, 256, %s29_s13, [#allocation3], %s448_s14, %s448_s14, %s449_s15  }
   0x5   :  { %443 = dma.done.wait [#allocation3], 256  }
   0x6   :  { %444 = vsyncadd [#allocation3], 4294967040  ;;  %v374_v0 = vld [vmem:[#allocation2 + $0x8] sm:$0xff]  ;;  %v373_v2 = vld [vmem:[#allocation2] sm:$0xff]  ;;  %vm86_vm0 = vcmask 261120   ;;  %vm71_vm1 = vcmask 1041409  }
   0x7   :  { %v372_v1 = vld [vmem:[%s558_s1 + $0x8] sm:$0xff]  ;;  %v50_v3 = vld [vmem:[%s557_s0] sm:$0xff]  ;;  %133 = vmatpush.bf16.msra.mxu1 %v374_v0  ;;  %s450_s29 = smov 96   ;;  %vm183_vm2 = vcmask 31744   ;;  %vm227_vm3 = vcmask 1041408   ;;  %s451_s12 = smov [#allocation5]  }
   0x8   :  { %v51_v4 = vld [vmem:[%s557_s0 + $0x8] sm:$0xff]  ;;  %96 = vmatpush.bf16.msra.mxu0 %v372_v1  ;;  %v371_v5 = vld [vmem:[%s558_s1] sm:$0xff]  ;;  %v52_v6 = vpack.c.bf16 %v50_v3, %v50_v3  ;;  %s320_s13 = sshll.u32 %s451_s12, 4  ;;  %s322_s16 = sshll.u32 %s566_s9, 4  ;;  %vm313_vm4 = vcmask 123904   ;;  %s321_s13 = int_to_ptr.vmem [resolvable:$true] %s320_s13  ;;  %s323_s16 = int_to_ptr.hbm [resolvable:$true] %s322_s16 }
   0x9   :  { %v53_v7 = vpack.c.bf16 %v51_v4, %v51_v4  ;;  %v376_v16 = vld [vmem:[%s564_s7 + $0x8] sm:$0xff]  ;;  %v375_v17 = vld [vmem:[%s564_s7] sm:$0xff] }
   0xa   :  { %v64_v8 = vunpack.c.l.b16 %v52_v6  ;;  %175 = vmatpush.bf16.msra.mxu2 %v376_v16  ;;  %v384_v18 = vld [vmem:[%s561_s4] ss:$0 sm:$0xff] }
   0xb   :  { %v65_v9 = vunpack.c.l.b16 %v53_v7  ;;  %134 = vmatpush.bf16.msra.mxu1 %v373_v2  ;;  %v385_v21 = vld [vmem:[%s559_s2] ss:$0 sm:$0xff] }
   0xc   :  { %97 = vmatpush.bf16.msra.mxu0 %v371_v5  ;;  %v332_v10 = vunpack.i.l.s16 %v64_v8  ;;  %v223_v43 = vld [vmem:[%s565_s8] sm:$0x3] }
   0xd   :  { %v333_v11 = vunpack.i.l.s16 %v65_v9  ;;  %v111_v12 = vpack.c.b16 %v65_v9, %v64_v8  ;;  %v229_v44 = vsel %vm227_vm3, %v223_v43, 0 }
   0xe   :  { %176 = vmatpush.bf16.msra.mxu2 %v375_v17  ;;  %238 = vmatpush.bf16.msra.mxu3 %v229_v44 }
   0xf   :  { %v70_v13 = vrot.slane %v333_v11, 7  ;;  %351 = vmatmul.msk.bf16.vlgmr.msra.gmra.mxu1 %vm86_vm0, %v111_v12  ;;  %v378_v12 = vld [vmem:[%s562_s5 + $0x8] sm:$0xff] }
  0x11   :  { %v72_v14 = vsel %vm71_vm1, %v70_v13, %v332_v10  ;;  %v377_v13 = vld [vmem:[%s562_s5] sm:$0xff] }
  0x12   :  { %v73_v15 = vpack.c.b16 %v72_v14, %v72_v14  ;;  %306 = vmatpush.bf16.msrb.mxu3 %v378_v12 }
  0x14   :  { %342 = vmatmul.msk.bf16.vlgmr.msra.gmra.mxu0 %vm86_vm0, %v73_v15 }
  0x16   :  { %307 = vmatpush.bf16.msrb.mxu3 %v377_v13 }
  0x8c   :  { %v136_v19 = vpop.f32.mrf.mxu1 }
  0x8d   :  { %v137_v20 = vadd.f32 %v384_v18, %v136_v19 }
  0x8f   :  { %247 = vrot.lane.b32.xlu0 %v137_v20, %s450_s29 }
  0x91   :  { %v99_v22 = vpop.f32.mrf.mxu0 }
  0x92   :  { %v100_v23 = vadd.f32 %v385_v21, %v99_v22 }
  0x94   :  { %v142_v24 = vrot.slane %v100_v23, 1  ;;  %v143_v25 = vperm.slane %v100_v23, 0  ;;  %v138_v26 = vpop.f32.mrf.mxu1 }
  0x95   :  { %v139_v28 = vadd.f32 %v384_v18, %v138_v26 }
  0x96   :  { %v144_v27 = vperm.slane %v142_v24, 0  ;;  %v147_v29 = vmul.f32 %v143_v25, %v137_v20 }
  0x97   :  { %249 = vrot.lane.b32.xlu0 %v139_v28, %s450_s29 }
  0x98   :  { %v148_v30 = vmul.f32 %v144_v27, %v139_v28 }
  0x99   :  { %v101_v31 = vpop.f32.mrf.mxu0 }
  0x9a   :  { %v149_v32 = vpack.c.bf16 %v148_v30, %v147_v29 }
  0x9c   :  { %360 = vmatmul.msk.bf16.vlgmr.msra.gmra.mxu2 %vm86_vm0, %v149_v32 }
 0x101   :  { %v248_v14 = vpop.permute.xlu0 %247 }
 0x109   :  { %v250_v20 = vpop.permute.xlu0 %249 }
 0x11f   :  { %v178_v33 = vpop.f32.mrf.mxu2 }
 0x120   :  { %v184_v34 = vsel %vm183_vm2, %v178_v33, -inf }
 0x121   :  { %v185_v35 = vrot.slane %v184_v34, 4 }
 0x123   :  { %v186_v36 = vmax.f32 %v184_v34, %v185_v35 }
 0x125   :  { %v187_v37 = vrot.slane %v186_v36, 2 }
 0x127   :  { %v188_v38 = vmax.f32 %v186_v36, %v187_v37  ;;  %v180_v39 = vpop.f32.mrf.mxu2 }
 0x128   :  { %v191_v40 = vsel %vm183_vm2, %v180_v39, -inf }
 0x129   :  { %v189_v41 = vrot.slane %v188_v38, 1  ;;  %v192_v42 = vrot.slane %v191_v40, 4 }
 0x12b   :  { %v190_v45 = vmax.f32 %v188_v38, %v189_v41  ;;  %v193_v46 = vmax.f32 %v191_v40, %v192_v42  ;;  %v386_v40 = vld [vmem:[%s563_s6] ss:$0 sm:$0xff] }
 0x12d   :  { %v198_v47 = vsub.f32 %v178_v33, %v190_v45  ;;  %v194_v48 = vrot.slane %v193_v46, 2 }
 0x12f   :  { %v200_v49 = vmul.f32 1.442695, %v198_v47  ;;  %v195_v50 = vmax.f32 %v193_v46, %v194_v48 }
 0x131   :  { %387 = vpow2.f32 %v200_v49  ;;  %v196_v51 = vrot.slane %v195_v50, 1 }
 0x133   :  { %v197_v52 = vmax.f32 %v195_v50, %v196_v51 }
 0x135   :  { %v199_v53 = vsub.f32 %v180_v39, %v197_v52 }
 0x137   :  { %v388_v54 = vpop.eup %387  ;;  %v202_v55 = vmul.f32 1.442695, %v199_v53 }
 0x138   :  { %v204_v56 = vsel %vm183_vm2, %v388_v54, 0.0 }
 0x139   :  { %v205_v57 = vrot.slane %v204_v56, 4  ;;  %389 = vpow2.f32 %v202_v55 }
 0x13b   :  { %v206_v58 = vadd.f32 %v205_v57, %v204_v56 }
 0x13d   :  { %v207_v59 = vrot.slane %v206_v58, 2 }
 0x13f   :  { %v390_v60 = vpop.eup %389  ;;  %v208_v61 = vadd.f32 %v207_v59, %v206_v58 }
 0x140   :  { %v211_v62 = vsel %vm183_vm2, %v390_v60, 0.0 }
 0x141   :  { %v212_v63 = vrot.slane %v211_v62, 4  ;;  %v209_v0 = vrot.slane %v208_v61, 1 }
 0x143   :  { %v213_v1 = vadd.f32 %v212_v63, %v211_v62  ;;  %v210_v4 = vadd.f32 %v209_v0, %v208_v61 }
 0x145   :  { %v214_v2 = vrot.slane %v213_v1, 2  ;;  %391 = vrcp.f32 %v210_v4 }
 0x147   :  { %v215_v3 = vadd.f32 %v214_v2, %v213_v1 }
 0x149   :  { %v216_v5 = vrot.slane %v215_v3, 1 }
 0x14b   :  { %v217_v6 = vadd.f32 %v216_v5, %v215_v3  ;;  %v392_v7 = vpop.eup %391 }
 0x14c   :  { %v220_v9 = vmul.f32 %v392_v7, %v388_v54 }
 0x14d   :  { %393 = vrcp.f32 %v217_v6 }
 0x153   :  { %v394_v8 = vpop.eup %393 }
 0x154   :  { %v221_v10 = vmul.f32 %v394_v8, %v390_v60 }
 0x156   :  { %v222_v11 = vpack.c.bf16 %v221_v10, %v220_v9 }
 0x158   :  { %361 = vmatmul.msk.bf16.vlgmr.msra.gmra.mxu3 %vm183_vm2, %v222_v11 }
 0x1db   :  { %v240_v15 = vpop.f32.mrf.mxu3 }
 0x1dc   :  { %v253_v16 = vmul.f32 %v248_v14, %v240_v15 }
 0x1de   :  { %v255_v17 = vsel %vm86_vm0, %v253_v16, 0.0 }
 0x1df   :  { %v256_v18 = vrot.slane %v255_v17, 4 }
 0x1e1   :  { %v257_v19 = vadd.f32 %v256_v18, %v255_v17 }
 0x1e3   :  { %v258_v21 = vrot.slane %v257_v19, 2  ;;  %v242_v22 = vpop.f32.mrf.mxu3 }
 0x1e4   :  { %v254_v23 = vmul.f32 %v250_v20, %v242_v22 }
 0x1e5   :  { %v259_v24 = vadd.f32 %v258_v21, %v257_v19 }
 0x1e6   :  { %v262_v25 = vsel %vm86_vm0, %v254_v23, 0.0 }
 0x1e7   :  { %v263_v26 = vrot.slane %v262_v25, 4  ;;  %v260_v27 = vrot.slane %v259_v24, 1 }
 0x1e9   :  { %v264_v28 = vadd.f32 %v263_v26, %v262_v25  ;;  %v261_v30 = vadd.f32 %v260_v27, %v259_v24 }
 0x1eb   :  { %v265_v29 = vrot.slane %v264_v28, 2  ;;  %v269_v33 = vpack.c.bf16 %v261_v30, %v261_v30 }
 0x1ed   :  { %v266_v31 = vadd.f32 %v265_v29, %v264_v28  ;;  %v281_v36 = vunpack.c.l.b16 %v269_v33 }
 0x1ef   :  { %v267_v32 = vrot.slane %v266_v31, 1 }
 0x1f1   :  { %v268_v34 = vadd.f32 %v267_v32, %v266_v31 }
 0x1f3   :  { %v270_v35 = vpack.c.bf16 %v268_v34, %v268_v34 }
 0x1f5   :  { %v282_v37 = vunpack.c.l.b16 %v270_v35 }
 0x1f7   :  { %v283_v38 = vsel %vm71_vm1, %v282_v37, %v281_v36 }
 0x1f8   :  { %v284_v39 = vpack.c.b16 %v283_v38, %v283_v38 }
 0x1fa   :  { %370 = vmatmul.msk.bf16.vlgmr.msrb.gmra.mxu3 %vm86_vm0, %v284_v39 }
 0x27d   :  { %v309_v41 = vpop.f32.mrf.mxu3 }
 0x27e   :  { %v310_v42 = vadd.f32 %v386_v40, %v309_v41 }
 0x280   :  { %314 = vst.msk [vmem:[#allocation5] sm:$0x3] %vm313_vm4, %v310_v42 }
 0x281   :  { %325 = dma.vmem_to_hbm [thread:$0]  %s321_s13, 32, %s323_s16, [#allocation4]  }
 0x285   :  { %v311_v43 = vpop.f32.mrf.mxu3 }
 0x286   :  { %445 = dma.done.wait [#allocation4], 32  }
 0x287   :  { %446 = vsyncadd [#allocation4], 4294967264 }
 0x288   :  { %330 = vsyncpa [#allocation3], 1 }
 0x289   :  { %331 = vsyncpa [#allocation4], 1 }

</bundles_post_ra>
